<compile_context>
chip_gen: v7x
topology: tpu7x:2x2x1
jax: 0.10.0
libtpu: 0.0.40
codegen_flags: <defaults>
</compile_context>

<pallas_src>
import jax
import jax.numpy as jnp
from jax.experimental import pallas as pl
from jax.experimental.pallas import tpu as pltpu


def _pointwise_kernel(x_ref, o_ref):
    # Load native dtype, compute in f32 on the VPU/EUP, store native dtype.
    x = x_ref[...].astype(jnp.float32)
    v = jnp.round((x + 10.0) * 20.0) - 10.0   # round-half-to-even == torch.round
    o_ref[...] = jax.nn.sigmoid(v).astype(o_ref.dtype)


def _pointwise_jnp(x):
    """Plain-JAX elementwise path (tiny tails / reference)."""
    xf = x.astype(jnp.float32)
    return jax.nn.sigmoid(jnp.round((xf + 10.0) * 20.0) - 10.0).astype(x.dtype)


def _block_budget():
    """Generation-aware (block_bytes, vmem_limit_bytes)."""
    try:
        cap = pltpu.get_tpu_info().vmem_capacity_bytes
    except Exception:
        cap = 64 * 1024 * 1024  # conservative fallback
    if cap <= 64 * 1024 * 1024:
        # v7x: 64 MiB VMEM per TC.  8 MiB blocks -> 32 MiB double-buffered
        # (in + out); 48 MiB scoped limit leaves headroom.
        return 8 * 1024 * 1024, 48 * 1024 * 1024
    # v5e / v6e: 128 MiB physical VMEM.  16 MiB blocks -> 64 MiB buffers.
    return 16 * 1024 * 1024, 80 * 1024 * 1024


_MIN_STEPS = 4                       # keep >= 4 grid steps for pipelining / megacore
_SINGLE_BLOCK_BYTES = 1 * 1024 * 1024  # below this, one full block (step overhead dominates)


def _run_pallas_2d(x2d, tile_rows, vmem_limit):
    rows, width = x2d.shape
    grid = (pl.cdiv(rows, tile_rows),)
    return pl.pallas_call(
        _pointwise_kernel,
        out_shape=jax.ShapeDtypeStruct((rows, width), x2d.dtype),
        grid_spec=pltpu.PrefetchScalarGridSpec(
            num_scalar_prefetch=0,
            grid=grid,
            in_specs=[pl.BlockSpec((tile_rows, width), lambda i: (i, 0))],
            out_specs=pl.BlockSpec((tile_rows, width), lambda i: (i, 0)),
        ),
        compiler_params=pltpu.CompilerParams(
            dimension_semantics=("parallel",),
            vmem_limit_bytes=vmem_limit,
        ),
    )(x2d)


def model_forward(x1: jax.Array) -> jax.Array:
    """Pallas implementation of the PyTorch Model.forward (pure elementwise)."""
    orig_shape = x1.shape
    dtype = x1.dtype
    n = x1.size
    itemsize = jnp.dtype(dtype).itemsize
    # dtype-specific sublane multiple: f32 -> 8, bf16/f16 -> 16, int8/fp8 -> 32
    sublane = {1: 32, 2: 16}.get(itemsize, 8)

    flat = x1.reshape(-1)

    # Widest lane-dense width that divides n -> no padding needed.
    width = None
    for w in (2048, 1024, 512, 256, 128):
        if n % w == 0:
            width = w
            break

    tail = None
    if width is None:
        # Rare path: element count not a multiple of 128.  Run Pallas on the
        # main part and the <128-element tail with plain jnp -- avoids the
        # pad + slice full-array HBM round trips.
        width = 128
        n_main = (n // width) * width
        if n_main == 0:
            return _pointwise_jnp(flat).reshape(orig_shape)
        tail = flat[n_main:]
        flat = flat[:n_main]

    x2d = flat.reshape(-1, width)               # lane-dense slab (rows, width)
    rows = x2d.shape[0]
    bytes_per_row = width * itemsize
    total_bytes = rows * bytes_per_row

    block_bytes, vmem_limit = _block_budget()

    if total_bytes <= _SINGLE_BLOCK_BYTES or rows <= sublane:
        # Tiny input: one full-array block (full dims are always legal).
        tile_rows = rows
    else:
        # Target the big per-generation block, but clamp so the grid keeps at
        # least _MIN_STEPS steps (pipelining + megacore sharding on v7x).
        target_rows = max(sublane, (block_bytes // bytes_per_row) // sublane * sublane)
        cap_rows = max(sublane, pl.cdiv(rows, _MIN_STEPS) // sublane * sublane)
        tile_rows = min(target_rows, cap_rows)
        if tile_rows >= rows:
            tile_rows = rows

    out2d = _run_pallas_2d(x2d, tile_rows, vmem_limit)
    out_flat = out2d.reshape(-1)
    if tail is not None:
        out_flat = jnp.concatenate([out_flat, _pointwise_jnp(tail)])
    return out_flat.reshape(orig_shape)


if __name__ == "__main__":
    key = jax.random.PRNGKey(0)
    # Small NCHW shape consistent with the module's image input.
    x1 = jax.random.normal(key, (2, 4, 16, 16), dtype=jnp.float32)

    out = model_forward(x1)
    jax.block_until_ready(out)

    ref = _pointwise_jnp(x1)
    assert out.shape == x1.shape and out.dtype == x1.dtype
    assert jnp.allclose(out, ref, atol=1e-6, rtol=1e-6)

    # Also exercise a larger, multi-step grid path (and the 224x224 shape from
    # the original spec, whose element count is not divisible by 2048).
    x2 = jax.random.normal(jax.random.PRNGKey(1), (1, 3, 224, 224), dtype=jnp.float32)
    out2 = model_forward(x2)
    jax.block_until_ready(out2)
    assert jnp.allclose(out2, _pointwise_jnp(x2), atol=1e-6, rtol=1e-6)

    print("KERNEL_OK")
</pallas_src>

<mosaic_0001>
module attributes {stable_mosaic.version = 11 : i64} {
  func.func @_pointwise_kernel(%arg0: i32, %arg1: memref<1x2048xf32, #tpu.memory_space<vmem>>, %arg2: memref<1x2048xf32, #tpu.memory_space<vmem>>) attributes {dimension_semantics = [#tpu.dimension_semantics<parallel>], iteration_bounds = array<i64: 1>, scalar_prefetch = 0 : i64, scratch_operands = 0 : i64, tpu.core_type = #tpu.core_type<tc>, window_params = [{transform_indices = @transform_0, window_bounds = array<i64: 1, 2048>}, {transform_indices = @transform_1, window_bounds = array<i64: 1, 2048>}]} {
    %c0 = arith.constant 0 : index
    %c0_0 = arith.constant 0 : index
    %0 = vector.load %arg1[%c0, %c0_0] : memref<1x2048xf32, #tpu.memory_space<vmem>>, vector<1x2048xf32>
    %cst = arith.constant 1.000000e+01 : f32
    %1 = vector.broadcast %cst : f32 to vector<1x2048xf32>
    %2 = arith.addf %0, %1 : vector<1x2048xf32>
    %cst_1 = arith.constant 2.000000e+01 : f32
    %3 = vector.broadcast %cst_1 : f32 to vector<1x2048xf32>
    %4 = arith.mulf %2, %3 : vector<1x2048xf32>
    %5 = math.roundeven %4 : vector<1x2048xf32>
    %cst_2 = arith.constant 1.000000e+01 : f32
    %6 = vector.broadcast %cst_2 : f32 to vector<1x2048xf32>
    %7 = arith.subf %5, %6 : vector<1x2048xf32>
    %8 = arith.negf %7 : vector<1x2048xf32>
    %9 = math.exp %8 : vector<1x2048xf32>
    %cst_3 = arith.constant 1.000000e+00 : f32
    %10 = vector.broadcast %cst_3 : f32 to vector<1x2048xf32>
    %11 = arith.addf %10, %9 : vector<1x2048xf32>
    %12 = arith.divf %10, %11 : vector<1x2048xf32>
    %c0_4 = arith.constant 0 : index
    %c0_5 = arith.constant 0 : index
    %13 = vector.load %arg2[%c0_4, %c0_5] : memref<1x2048xf32, #tpu.memory_space<vmem>>, vector<1x2048xf32>
    tpu.vector_store %arg2[%c0_4, %c0_5], %12 {strides = array<i32>} : memref<1x2048xf32, #tpu.memory_space<vmem>>, vector<1x2048xf32>,
    return
  }
  func.func @transform_0(%arg0: i32) -> (i32, i32) {
    %c0_i32 = arith.constant 0 : i32
    %c0_i32_0 = arith.constant 0 : i32
    return %arg0, %c0_i32 : i32, i32
  }
  func.func @transform_1(%arg0: i32) -> (i32, i32) {
    %c0_i32 = arith.constant 0 : i32
    %c0_i32_0 = arith.constant 0 : i32
    return %arg0, %c0_i32 : i32, i32
  }
}

</mosaic_0001>

<bundles_post_ra>
// kernel: tpu_custom_call.1
= control target key start
LH: loop header
LB: loop body
LE: loop exit
PB: predicated region body
PF: predicated region fallthrough
CT: control target
= control target key end

     0   :  { %6 = vsyncpa [#allocation3], 0  ;;  %s160_s0 = inlined_call_operand.hbm [shape: f32[1,2048], index: 0, kind: input, shape index: {}]   ;;  %s161_s1 = inlined_call_operand.hbm [shape: f32[1,2048], index: 1, kind: output, shape index: {}]  }
   0x1   :  { %7 = vsyncpa [#allocation4], 0  ;;  %s124_s6 = smov [#allocation2]   ;;  %s76_s10 = scalar_lea.hbm %s160_s0, 256 }
   0x2   :  { %s14_s7 = sshll.u32 %s124_s6, 4  ;;  %p77_p0 = scmp.ne.s32.totalorder %s160_s0, %s76_s10  ;;  %s15_s7 = int_to_ptr.vmem [resolvable:$true] %s14_s7 }
   0x3   :  { %p80_p1 = scmp.lt.u32.totalorder %s76_s10, %s160_s0 }
   0x5   :  { %p82_p2 = pnand %p80_p1, %p77_p0 }
   0x7   :  { %85 = shalt.err (!%p82_p2)
}
   0x8   :  { %s86_s15 = scalar_lea.vmem %s15_s7, 256  ;;  %p91_p4 = scmp.lt.s32.totalorder %s15_s7, %s15_s7 }
   0x9   :  { %p87_p3 = scmp.ne.s32.totalorder %s15_s7, %s86_s15  ;;  %p92_p5 = scmp.lt.s32.totalorder %s86_s15, %s86_s15 }
   0xb   :  { %p93_p6 = por %p92_p5, %p91_p4 }
   0xd   :  { %p94_p7 = pnand %p93_p6, %p87_p3 }
   0xf   :  { %97 = shalt.err (!%p94_p7)
}
  0x10   :  { %17 = dma.hbm_to_vmem [thread:$0]  %s160_s0, 256, %s15_s7, [#allocation3]  }
  0x11   :  { %120 = dma.done.wait [#allocation3], 256  }
  0x12   :  { %121 = vsyncadd [#allocation3], 4294967040  ;;  %v21_v0 = vld [vmem:[#allocation2] sm:$0xff]  ;;  %v22_v1 = vld [vmem:[#allocation2 + $0x8] sm:$0xff]  ;;  %s125_s0 = smov [#allocation5]  }
  0x13   :  { %v23_v2 = vadd.f32 10.0, %v21_v0  ;;  %v24_v3 = vadd.f32 10.0, %v22_v1  ;;  %s51_s18 = sshll.u32 %s125_s0, 4  ;;  %s52_s18 = int_to_ptr.vmem [resolvable:$true] %s51_s18 }
  0x14   :  { %s98_s19 = scalar_lea.vmem %s52_s18, 256  ;;  %p103_p9 = scmp.lt.s32.totalorder %s52_s18, %s52_s18 }
  0x15   :  { %v25_v4 = vmul.f32 20.0, %v23_v2  ;;  %v26_v5 = vmul.f32 20.0, %v24_v3  ;;  %p99_p8 = scmp.ne.s32.totalorder %s52_s18, %s98_s19  ;;  %p104_p10 = scmp.lt.s32.totalorder %s98_s19, %s98_s19 }
  0x17   :  { %v64_v6 = vround.rtne.f32 %v25_v4  ;;  %v65_v7 = vround.rtne.f32 %v26_v5  ;;  %p105_p11 = por %p104_p10, %p103_p9 }
  0x19   :  { %v60_v8 = vadd.f32 -10.0, %v64_v6  ;;  %v61_v9 = vadd.f32 -10.0, %v65_v7  ;;  %p106_p12 = pnand %p105_p11, %p99_p8 }
  0x1b   :  { %v62_v10 = vmul.f32 -1.442695, %v60_v8  ;;  %v63_v11 = vmul.f32 -1.442695, %v61_v9 }
  0x1d   :  { %68 = vpow2.f32 %v62_v10 }
  0x1e   :  { %70 = vpow2.f32 %v63_v11 }
  0x27   :  { %v69_v12 = vpop.eup %68 }
  0x28   :  { %v71_v13 = vpop.eup %70  ;;  %v37_v14 = vadd.f32 1.0, %v69_v12 }
  0x29   :  { %v38_v15 = vadd.f32 1.0, %v71_v13 }
  0x2a   :  { %72 = vrcp.f32 %v37_v14 }
  0x2b   :  { %74 = vrcp.f32 %v38_v15 }
  0x34   :  { %v73_v16 = vpop.eup %72 }
  0x35   :  { %v75_v17 = vpop.eup %74  ;;  %43 = vst [vmem:[#allocation5] sm:$0xff] %v73_v16 }
  0x36   :  { %44 = vst [vmem:[#allocation5 + $0x8] sm:$0xff] %v75_v17 }
  0x37   :  { %109 = shalt.err (!%p106_p12)
}
  0x38   :  { %s110_s22 = scalar_lea.hbm %s161_s1, 256 }
  0x39   :  { %p111_p13 = scmp.ne.s32.totalorder %s161_s1, %s110_s22  ;;  %p114_p0 = scmp.lt.u32.totalorder %s110_s22, %s161_s1 }
  0x3b   :  { %p116_p1 = pnand %p114_p0, %p111_p13 }
  0x3d   :  { %119 = shalt.err (!%p116_p1)
}
  0x3e   :  { %54 = dma.vmem_to_hbm [thread:$0]  %s52_s18, 256, %s161_s1, [#allocation4]  }
  0x3f   :  { %122 = dma.done.wait [#allocation4], 256  }
  0x40   :  { %123 = vsyncadd [#allocation4], 4294967040 }
  0x41   :  { %58 = vsyncpa [#allocation3], 1 }
  0x42   :  { %59 = vsyncpa [#allocation4], 1 }

</bundles_post_ra>
